<compile_context>
chip_gen: v5e
topology: v5e:2x2
jax: 0.10.0
libtpu: 0.0.40
codegen_flags: <defaults>
</compile_context>

<pallas_src>
import jax
import jax.numpy as jnp
from jax.experimental import pallas as pl
from jax.experimental.pallas import tpu as pltpu

STATE_DIM = 32
ACTION_DIM = 8
HIDDEN = 256
LN_EPS = 1e-5


def _round_up(x, m):
    return ((x + m - 1) // m) * m


def _layernorm(h):
    # Affine (gamma/beta) is folded into the next linear layer at param prep,
    # so only normalization remains.  Single-pass stats: var = E[h^2] - E[h]^2.
    mu = jnp.mean(h, axis=-1, keepdims=True)
    ms = jnp.mean(h * h, axis=-1, keepdims=True)
    var = jnp.maximum(ms - mu * mu, 0.0)
    return (h - mu) * jax.lax.rsqrt(var + LN_EPS)


def actor_kernel(x_ref, w1_ref, w2_ref, w3_ref, vec_ref, mean_ref):
    x = x_ref[...]                                   # (TB, STATE_DIM) f32

    # Coalesced (8, HIDDEN) vector block: rows = [b1, b2', b3'(first 8 lanes), 0...]
    b1 = vec_ref[0:1, :]
    b2 = vec_ref[1:2, :]
    b3 = vec_ref[2:3, :ACTION_DIM]

    # Layer 1: Linear(state_dim, 256) -> ReLU -> LayerNorm(256) (affine folded fwd)
    h = jnp.dot(x.astype(jnp.bfloat16), w1_ref[...],
                preferred_element_type=jnp.float32) + b1
    h = jnp.maximum(h, 0.0)
    h = _layernorm(h)

    # Layer 2: Linear(256, 256) -> ReLU -> LayerNorm(256) (affine folded fwd)
    h = jnp.dot(h.astype(jnp.bfloat16), w2_ref[...],
                preferred_element_type=jnp.float32) + b2
    h = jnp.maximum(h, 0.0)
    h = _layernorm(h)

    # Layer 3: Linear(256, action_dim) -> Tanh  (narrow, unpadded output store)
    out = jnp.dot(h.astype(jnp.bfloat16), w3_ref[...],
                  preferred_element_type=jnp.float32) + b3
    mean_ref[...] = jnp.tanh(out)


def actor_forward(state, params, tb_target=1024):
    """Returns (mean, std) — the parameters of Normal(mean, std)."""
    B = state.shape[0]

    # Tile-size policy: as large as possible (amortize per-step overhead), but
    # keep >= 2 grid steps when the batch allows it so the "parallel" batch
    # axis can shard across v7x's two TensorCores.
    b8 = _round_up(B, 8)
    if b8 > 8:
        half = _round_up(pl.cdiv(b8, 2), 8)
        tb = max(8, min(tb_target, half))
    else:
        tb = b8
    grid_b = pl.cdiv(B, tb)
    Bp = grid_b * tb
    if Bp != B:
        state = jnp.pad(state, ((0, Bp - B), (0, 0)))

    const2 = lambda i: (0, 0)            # params stay VMEM-resident across steps
    mean = pl.pallas_call(
        actor_kernel,
        out_shape=jax.ShapeDtypeStruct((Bp, ACTION_DIM), jnp.float32),
        grid=(grid_b,),
        in_specs=[
            pl.BlockSpec((tb, STATE_DIM), lambda i: (i, 0)),      # state (batch-tiled)
            pl.BlockSpec((STATE_DIM, HIDDEN), const2),            # w1
            pl.BlockSpec((HIDDEN, HIDDEN), const2),               # w2 (LN1 affine folded)
            pl.BlockSpec((HIDDEN, ACTION_DIM), const2),           # w3 (LN2 affine folded)
            pl.BlockSpec((8, HIDDEN), const2),                    # coalesced biases
        ],
        out_specs=pl.BlockSpec((tb, ACTION_DIM), lambda i: (i, 0)),
        compiler_params=pltpu.CompilerParams(
            dimension_semantics=("parallel",)),
    )(state, params["w1"], params["w2"], params["w3"], params["vec"])

    if Bp != B:
        mean = mean[:B]
    # std is batch-independent -> computed once outside the kernel.
    std = jnp.exp(jnp.clip(params["log_std"], -20.0, 2.0))
    return mean, std


def init_params(key):
    k1, k2, k3 = jax.random.split(key, 3)

    def linear_init(k, fan_in, fan_out):
        # PyTorch nn.Linear default: U(-1/sqrt(fan_in), 1/sqrt(fan_in))
        bound = 1.0 / jnp.sqrt(fan_in)
        kw, kb = jax.random.split(k)
        w = jax.random.uniform(kw, (fan_in, fan_out), jnp.float32, -bound, bound)
        b = jax.random.uniform(kb, (fan_out,), jnp.float32, -bound, bound)
        return w, b

    w1, b1 = linear_init(k1, STATE_DIM, HIDDEN)
    w2, b2 = linear_init(k2, HIDDEN, HIDDEN)
    w3, b3 = linear_init(k3, HIDDEN, ACTION_DIM)

    g1 = jnp.ones((HIDDEN,), jnp.float32)
    be1 = jnp.zeros((HIDDEN,), jnp.float32)
    g2 = jnp.ones((HIDDEN,), jnp.float32)
    be2 = jnp.zeros((HIDDEN,), jnp.float32)

    # Fold LayerNorm affine into the *following* linear layer (exact, in f32):
    #   (xhat*g + be) @ W + b  ==  xhat @ (g[:,None]*W) + (be @ W + b)
    w2f = g1[:, None] * w2
    b2f = be1 @ w2 + b2
    w3f = g2[:, None] * w3
    b3f = be2 @ w3 + b3

    # Coalesce biases into one aligned (8, HIDDEN) block:
    #   row 0 = b1, row 1 = b2', row 2[:ACTION_DIM] = b3'
    vec = jnp.zeros((8, HIDDEN), jnp.float32)
    vec = vec.at[0].set(b1).at[1].set(b2f).at[2, :ACTION_DIM].set(b3f)

    return {
        "w1": w1.astype(jnp.bfloat16),
        "w2": w2f.astype(jnp.bfloat16),
        "w3": w3f.astype(jnp.bfloat16),
        "vec": vec,
        "log_std": jnp.full((ACTION_DIM,), -0.5, jnp.float32),
    }


def _reference_forward(state, params):
    # Pure-JAX f32 reference (uses the same bf16-rounded weights) of the
    # original PyTorch graph with explicit (identity) LN affines.
    def ln(h):
        mu = jnp.mean(h, axis=-1, keepdims=True)
        var = jnp.mean((h - mu) ** 2, axis=-1, keepdims=True)
        return (h - mu) / jnp.sqrt(var + LN_EPS)

    w1 = params["w1"].astype(jnp.float32)
    w2 = params["w2"].astype(jnp.float32)
    w3 = params["w3"].astype(jnp.float32)
    b1 = params["vec"][0]
    b2 = params["vec"][1]
    b3 = params["vec"][2, :ACTION_DIM]
    h = ln(jnp.maximum(state @ w1 + b1, 0.0))
    h = ln(jnp.maximum(h @ w2 + b2, 0.0))
    return jnp.tanh(h @ w3 + b3)


if __name__ == "__main__":
    key = jax.random.PRNGKey(0)
    pkey, xkey = jax.random.split(key)
    params = init_params(pkey)
    state = jax.random.normal(xkey, (8, STATE_DIM), jnp.float32)

    mean, std = jax.jit(actor_forward)(state, params)
    jax.block_until_ready((mean, std))

    ref_mean = _reference_forward(state, params)
    assert mean.shape == (8, ACTION_DIM) and std.shape == (ACTION_DIM,)
    assert bool(jnp.all(jnp.isfinite(mean)))
    assert bool(jnp.max(jnp.abs(mean - ref_mean)) < 3e-2)
    assert bool(jnp.all(jnp.abs(mean) <= 1.0)) and bool(jnp.all(std > 0.0))
    print("KERNEL_OK")
</pallas_src>

<mosaic_0001>
module attributes {stable_mosaic.version = 11 : i64} {
  func.func @actor_kernel(%arg0: i32, %arg1: memref<8x32xf32, #tpu.memory_space<vmem>>, %arg2: memref<32x256xbf16, #tpu.memory_space<vmem>>, %arg3: memref<256x256xbf16, #tpu.memory_space<vmem>>, %arg4: memref<256x8xbf16, #tpu.memory_space<vmem>>, %arg5: memref<8x256xf32, #tpu.memory_space<vmem>>, %arg6: memref<8x8xf32, #tpu.memory_space<vmem>>) attributes {dimension_semantics = [#tpu.dimension_semantics<parallel>], iteration_bounds = array<i64: 1>, scalar_prefetch = 0 : i64, scratch_operands = 0 : i64, tpu.core_type = #tpu.core_type<tc>, window_params = [{transform_indices = @transform_0, window_bounds = array<i64: 8, 32>}, {pipeline_mode = #tpu.pipeline_mode<synchronous>, transform_indices = @transform_1, window_bounds = array<i64: 32, 256>}, {pipeline_mode = #tpu.pipeline_mode<synchronous>, transform_indices = @transform_2, window_bounds = array<i64: 256, 256>}, {pipeline_mode = #tpu.pipeline_mode<synchronous>, transform_indices = @transform_3, window_bounds = array<i64: 256, 8>}, {pipeline_mode = #tpu.pipeline_mode<synchronous>, transform_indices = @transform_4, window_bounds = array<i64: 8, 256>}, {transform_indices = @transform_5, window_bounds = array<i64: 8, 8>}]} {
    %c0 = arith.constant 0 : index
    %c0_0 = arith.constant 0 : index
    %0 = vector.load %arg1[%c0, %c0_0] : memref<8x32xf32, #tpu.memory_space<vmem>>, vector<8x32xf32>
    %c0_1 = arith.constant 0 : index
    %c0_2 = arith.constant 0 : index
    %1 = vector.load %arg5[%c0_1, %c0_2] : memref<8x256xf32, #tpu.memory_space<vmem>>, vector<1x256xf32>
    %c1 = arith.constant 1 : index
    %c0_3 = arith.constant 0 : index
    %2 = vector.load %arg5[%c1, %c0_3] : memref<8x256xf32, #tpu.memory_space<vmem>>, vector<1x256xf32>
    %c2 = arith.constant 2 : index
    %c0_4 = arith.constant 0 : index
    %3 = vector.load %arg5[%c2, %c0_4] : memref<8x256xf32, #tpu.memory_space<vmem>>, vector<1x8xf32>
    %4 = arith.truncf %0 : vector<8x32xf32> to vector<8x32xbf16>
    %c0_5 = arith.constant 0 : index
    %c0_6 = arith.constant 0 : index
    %5 = vector.load %arg2[%c0_5, %c0_6] : memref<32x256xbf16, #tpu.memory_space<vmem>>, vector<32x256xbf16>
    %cst = arith.constant dense<0.000000e+00> : vector<8x256xf32>
    %6 = tpu.matmul %4, %5, %cst {dimension_numbers = #tpu.dot_dimension_numbers<[1], [0], [0], [1], [0, 0, 1, 1], [], []>} : vector<8x32xbf16>, vector<32x256xbf16>, vector<8x256xf32> -> vector<8x256xf32>
    %7 = vector.broadcast %1 : vector<1x256xf32> to vector<8x256xf32>
    %8 = arith.addf %6, %7 : vector<8x256xf32>
    %cst_7 = arith.constant 0.000000e+00 : f32
    %9 = vector.broadcast %cst_7 : f32 to vector<8x256xf32>
    %10 = arith.maximumf %8, %9 : vector<8x256xf32>
    %cst_8 = arith.constant dense<0.000000e+00> : vector<8xf32>
    %11 = vector.multi_reduction <add>, %10, %cst_8 [1] : vector<8x256xf32> to vector<8xf32>
    %12 = vector.shape_cast %11 : vector<8xf32> to vector<8x1xf32>
    %cst_9 = arith.constant 2.560000e+02 : f32
    %13 = vector.broadcast %cst_9 : f32 to vector<8x1xf32>
    %14 = arith.divf %12, %13 : vector<8x1xf32>
    %15 = arith.mulf %10, %10 : vector<8x256xf32>
    %cst_10 = arith.constant dense<0.000000e+00> : vector<8xf32>
    %16 = vector.multi_reduction <add>, %15, %cst_10 [1] : vector<8x256xf32> to vector<8xf32>
    %17 = vector.shape_cast %16 : vector<8xf32> to vector<8x1xf32>
    %cst_11 = arith.constant 2.560000e+02 : f32
    %18 = vector.broadcast %cst_11 : f32 to vector<8x1xf32>
    %19 = arith.divf %17, %18 : vector<8x1xf32>
    %20 = arith.mulf %14, %14 : vector<8x1xf32>
    %21 = arith.subf %19, %20 : vector<8x1xf32>
    %cst_12 = arith.constant 0.000000e+00 : f32
    %22 = vector.broadcast %cst_12 : f32 to vector<8x1xf32>
    %23 = arith.maximumf %21, %22 : vector<8x1xf32>
    %24 = vector.broadcast %14 : vector<8x1xf32> to vector<8x256xf32>
    %25 = arith.subf %10, %24 : vector<8x256xf32>
    %cst_13 = arith.constant 9.99999974E-6 : f32
    %26 = vector.broadcast %cst_13 : f32 to vector<8x1xf32>
    %27 = arith.addf %23, %26 : vector<8x1xf32>
    %28 = math.rsqrt %27 : vector<8x1xf32>
    %29 = vector.broadcast %28 : vector<8x1xf32> to vector<8x256xf32>
    %30 = arith.mulf %25, %29 : vector<8x256xf32>
    %31 = arith.truncf %30 : vector<8x256xf32> to vector<8x256xbf16>
    %c0_14 = arith.constant 0 : index
    %c0_15 = arith.constant 0 : index
    %32 = vector.load %arg3[%c0_14, %c0_15] : memref<256x256xbf16, #tpu.memory_space<vmem>>, vector<256x256xbf16>
    %cst_16 = arith.constant dense<0.000000e+00> : vector<8x256xf32>
    %33 = tpu.matmul %31, %32, %cst_16 {dimension_numbers = #tpu.dot_dimension_numbers<[1], [0], [0], [1], [0, 0, 1, 1], [], []>} : vector<8x256xbf16>, vector<256x256xbf16>, vector<8x256xf32> -> vector<8x256xf32>
    %34 = vector.broadcast %2 : vector<1x256xf32> to vector<8x256xf32>
    %35 = arith.addf %33, %34 : vector<8x256xf32>
    %cst_17 = arith.constant 0.000000e+00 : f32
    %36 = vector.broadcast %cst_17 : f32 to vector<8x256xf32>
    %37 = arith.maximumf %35, %36 : vector<8x256xf32>
    %cst_18 = arith.constant dense<0.000000e+00> : vector<8xf32>
    %38 = vector.multi_reduction <add>, %37, %cst_18 [1] : vector<8x256xf32> to vector<8xf32>
    %39 = vector.shape_cast %38 : vector<8xf32> to vector<8x1xf32>
    %cst_19 = arith.constant 2.560000e+02 : f32
    %40 = vector.broadcast %cst_19 : f32 to vector<8x1xf32>
    %41 = arith.divf %39, %40 : vector<8x1xf32>
    %42 = arith.mulf %37, %37 : vector<8x256xf32>
    %cst_20 = arith.constant dense<0.000000e+00> : vector<8xf32>
    %43 = vector.multi_reduction <add>, %42, %cst_20 [1] : vector<8x256xf32> to vector<8xf32>
    %44 = vector.shape_cast %43 : vector<8xf32> to vector<8x1xf32>
    %cst_21 = arith.constant 2.560000e+02 : f32
    %45 = vector.broadcast %cst_21 : f32 to vector<8x1xf32>
    %46 = arith.divf %44, %45 : vector<8x1xf32>
    %47 = arith.mulf %41, %41 : vector<8x1xf32>
    %48 = arith.subf %46, %47 : vector<8x1xf32>
    %cst_22 = arith.constant 0.000000e+00 : f32
    %49 = vector.broadcast %cst_22 : f32 to vector<8x1xf32>
    %50 = arith.maximumf %48, %49 : vector<8x1xf32>
    %51 = vector.broadcast %41 : vector<8x1xf32> to vector<8x256xf32>
    %52 = arith.subf %37, %51 : vector<8x256xf32>
    %cst_23 = arith.constant 9.99999974E-6 : f32
    %53 = vector.broadcast %cst_23 : f32 to vector<8x1xf32>
    %54 = arith.addf %50, %53 : vector<8x1xf32>
    %55 = math.rsqrt %54 : vector<8x1xf32>
    %56 = vector.broadcast %55 : vector<8x1xf32> to vector<8x256xf32>
    %57 = arith.mulf %52, %56 : vector<8x256xf32>
    %58 = arith.truncf %57 : vector<8x256xf32> to vector<8x256xbf16>
    %c0_24 = arith.constant 0 : index
    %c0_25 = arith.constant 0 : index
    %59 = vector.load %arg4[%c0_24, %c0_25] : memref<256x8xbf16, #tpu.memory_space<vmem>>, vector<256x8xbf16>
    %cst_26 = arith.constant dense<0.000000e+00> : vector<8x8xf32>
    %60 = tpu.matmul %58, %59, %cst_26 {dimension_numbers = #tpu.dot_dimension_numbers<[1], [0], [0], [1], [0, 0, 1, 1], [], []>} : vector<8x256xbf16>, vector<256x8xbf16>, vector<8x8xf32> -> vector<8x8xf32>
    %61 = vector.broadcast %3 : vector<1x8xf32> to vector<8x8xf32>
    %62 = arith.addf %60, %61 : vector<8x8xf32>
    %63 = math.tanh %62 : vector<8x8xf32>
    %c0_27 = arith.constant 0 : index
    %c0_28 = arith.constant 0 : index
    %64 = vector.load %arg6[%c0_27, %c0_28] : memref<8x8xf32, #tpu.memory_space<vmem>>, vector<8x8xf32>
    tpu.vector_store %arg6[%c0_27, %c0_28], %63 {strides = array<i32>} : memref<8x8xf32, #tpu.memory_space<vmem>>, vector<8x8xf32>,
    return
  }
  func.func @transform_0(%arg0: i32) -> (i32, i32) {
    %c0_i32 = arith.constant 0 : i32
    %c0_i32_0 = arith.constant 0 : i32
    return %arg0, %c0_i32 : i32, i32
  }
  func.func @transform_1(%arg0: i32) -> (i32, i32) {
    %c0_i32 = arith.constant 0 : i32
    %c0_i32_0 = arith.constant 0 : i32
    %c0_i32_1 = arith.constant 0 : i32
    return %c0_i32, %c0_i32_0 : i32, i32
  }
  func.func @transform_2(%arg0: i32) -> (i32, i32) {
    %c0_i32 = arith.constant 0 : i32
    %c0_i32_0 = arith.constant 0 : i32
    %c0_i32_1 = arith.constant 0 : i32
    return %c0_i32, %c0_i32_0 : i32, i32
  }
  func.func @transform_3(%arg0: i32) -> (i32, i32) {
    %c0_i32 = arith.constant 0 : i32
    %c0_i32_0 = arith.constant 0 : i32
    %c0_i32_1 = arith.constant 0 : i32
    return %c0_i32, %c0_i32_0 : i32, i32
  }
  func.func @transform_4(%arg0: i32) -> (i32, i32) {
    %c0_i32 = arith.constant 0 : i32
    %c0_i32_0 = arith.constant 0 : i32
    %c0_i32_1 = arith.constant 0 : i32
    return %c0_i32, %c0_i32_0 : i32, i32
  }
  func.func @transform_5(%arg0: i32) -> (i32, i32) {
    %c0_i32 = arith.constant 0 : i32
    %c0_i32_0 = arith.constant 0 : i32
    return %arg0, %c0_i32 : i32, i32
  }
}

</mosaic_0001>

<bundles_post_ra>
// kernel: actor_forward.1
= control target key start
LH: loop header
LB: loop body
LE: loop exit
PB: predicated region body
PF: predicated region fallthrough
CT: control target
= control target key end

     0   :  { %10 = vsyncpa [#allocation3], 0  ;;  %s1087_s0 = inlined_call_operand.vmem [shape: f32[8,32], index: 0, kind: input, shape index: {}]   ;;  %s1088_s1 = inlined_call_operand.vmem [shape: bf16[32,256], index: 1, kind: input, shape index: {}]   ;;  %s1089_s2 = inlined_call_operand.hbm [shape: bf16[256,256], index: 2, kind: input, shape index: {}]   ;;  %s1090_s3 = inlined_call_operand.vmem [shape: bf16[256,8], index: 3, kind: input, shape index: {}]   ;;  %s1091_s4 = inlined_call_operand.vmem [shape: f32[8,256], index: 4, kind: input, shape index: {}]   ;;  %s1092_s5 = inlined_call_operand.hbm [shape: f32[8,8], index: 5, kind: output, shape index: {}]  }
   0x1   :  { %11 = vsyncpa [#allocation4], 0  ;;  %s20_s20 = sshll.u32 %s1089_s2, 4  ;;  %s925_s21 = smov [#allocation2]   ;;  %s21_s20 = int_to_ptr.hbm [resolvable:$true] %s20_s20 }
   0x2   :  { %s22_s22 = sshll.u32 %s925_s21, 4  ;;  %s926_s23 = smov 128   ;;  %s23_s22 = int_to_ptr.vmem [resolvable:$true] %s22_s22 }
   0x3   :  { %s927_s24 = smov 8  }
   0x4   :  { %28 = dma.hbm_to_vmem [thread:$0]  %s21_s20, 4096, %s23_s22, [#allocation3], %s926_s23, %s926_s23, %s927_s24  }
   0x5   :  { %921 = dma.done.wait [#allocation3], 4096  }
   0x6   :  { %922 = vsyncadd [#allocation3], 4294963200  ;;  %v608_v0 = vld [vmem:[%s1088_s1 + $0x10] sm:$0xf]  ;;  %v811_v1 = vld [vmem:[%s1088_s1 + $0x14] sm:$0xf0] }
   0x7   :  { %v810_v2 = vld [vmem:[%s1088_s1 + $0x14] sm:$0xf]  ;;  %v609_v3 = vor.u32 %v811_v1, %v608_v0  ;;  %v610_v4 = vld [vmem:[%s1088_s1 + $0x18] sm:$0xf0]  ;;  %v600_v5 = vld [vmem:[%s1088_s1] sm:$0xf] }
   0x8   :  { %v809_v6 = vld [vmem:[%s1088_s1 + $0x4] sm:$0xf0]  ;;  %v613_v7 = vor.u32 %v810_v2, %v610_v4  ;;  %v808_v8 = vld [vmem:[%s1088_s1 + $0x4] sm:$0xf]  ;;  %v602_v9 = vld [vmem:[%s1088_s1 + $0x8] sm:$0xf0] }
   0x9   :  { %83 = vmatpush.bf16.msra.mxu0 %v609_v3  ;;  %v601_v10 = vor.u32 %v809_v6, %v600_v5  ;;  %v38_v11 = vld [vmem:[%s1087_s0] sm:$0xff]  ;;  %v605_v12 = vor.u32 %v808_v8, %v602_v9  ;;  %vm73_vm0 = vcmask 261120   ;;  %v674_v29 = vld [vmem:[#allocation2 + $0x70] sm:$0xf]  ;;  %v827_v30 = vld [vmem:[#allocation2 + $0x74] sm:$0xf0] }
   0xa   :  { %96 = vmatpush.bf16.msra.mxu1 %v613_v7  ;;  %v43_v13 = vpack.c.bf16 %v38_v11, %v38_v11  ;;  %v39_v14 = vld [vmem:[%s1091_s4] ss:$8 sm:$0x3]  ;;  %v738_v31 = vld [vmem:[#allocation2 + $0xf0] sm:$0xf]  ;;  %v675_v32 = vor.u32 %v827_v30, %v674_v29  ;;  %v928_v41 = vmov 256.0  }
   0xb   :  { %v49_v15 = vperm.slane %v39_v14, 0  ;;  %v50_v16 = vperm.slane %v39_v14, 1  ;;  %v843_v33 = vld [vmem:[#allocation2 + $0xf4] sm:$0xf0]  ;;  %v826_v34 = vld [vmem:[#allocation2 + $0x74] sm:$0xf]  ;;  %865 = vrcp.f32 %v928_v41 }
   0xc   :  { %v676_v35 = vld [vmem:[#allocation2 + $0x78] sm:$0xf0]  ;;  %v739_v36 = vor.u32 %v843_v33, %v738_v31  ;;  %v842_v38 = vld [vmem:[#allocation2 + $0xf4] sm:$0xf]  ;;  %339 = vmatpush.bf16.msra.mxu2 %v675_v32  ;;  %v666_v42 = vld [vmem:[#allocation2 + $0x60] sm:$0xf] }
   0xd   :  { %84 = vmatpush.bf16.msra.mxu0 %v601_v10  ;;  %v679_v37 = vor.u32 %v826_v34, %v676_v35  ;;  %v740_v39 = vld [vmem:[#allocation2 + $0xf8] sm:$0xf0]  ;;  %v825_v43 = vld [vmem:[#allocation2 + $0x64] sm:$0xf0]  ;;  %v730_v44 = vld [vmem:[#allocation2 + $0xe0] sm:$0xf] }
   0xe   :  { %97 = vmatpush.bf16.msra.mxu1 %v605_v12  ;;  %v743_v40 = vor.u32 %v842_v38, %v740_v39  ;;  %352 = vmatpush.bf16.msra.mxu3 %v739_v36  ;;  %v667_v45 = vor.u32 %v825_v43, %v666_v42  ;;  %v841_v46 = vld [vmem:[#allocation2 + $0xe4] sm:$0xf0]  ;;  %v824_v47 = vld [vmem:[#allocation2 + $0x64] sm:$0xf]  ;;  %v668_v48 = vld [vmem:[#allocation2 + $0x68] sm:$0xf0] }
   0xf   :  { %v731_v49 = vor.u32 %v841_v46, %v730_v44  ;;  %v671_v50 = vor.u32 %v824_v47, %v668_v48  ;;  %v840_v51 = vld [vmem:[#allocation2 + $0xe4] sm:$0xf]  ;;  %v732_v52 = vld [vmem:[#allocation2 + $0xe8] sm:$0xf0]  ;;  %v658_v55 = vld [vmem:[#allocation2 + $0x50] sm:$0xf] }
  0x10   :  { %614 = vmatmul.msk.bf16.vlgmr.msra.gmra.mxu0 %vm73_vm0, %v43_v13  ;;  %340 = vmatpush.bf16.msra.mxu2 %v667_v45  ;;  %v735_v53 = vor.u32 %v840_v51, %v732_v52  ;;  %v823_v56 = vld [vmem:[#allocation2 + $0x54] sm:$0xf0]  ;;  %v722_v57 = vld [vmem:[#allocation2 + $0xd0] sm:$0xf]  ;;  %v822_v60 = vld [vmem:[#allocation2 + $0x54] sm:$0xf] }
  0x11   :  { %615 = vmatmul.msk.bf16.vlgmr.msra.gmra.mxu1 %vm73_vm0, %v43_v13  ;;  %365 = vmatpush.bf16.msrb.mxu0 %v679_v37  ;;  %v1003_v54 = vpop.eup %865  ;;  %v659_v58 = vor.u32 %v823_v56, %v658_v55  ;;  %v839_v59 = vld [vmem:[#allocation2 + $0xd4] sm:$0xf0]  ;;  %v660_v61 = vld [vmem:[#allocation2 + $0x58] sm:$0xf0]  ;;  %v838_v0 = vld [vmem:[#allocation2 + $0xd4] sm:$0xf] }
  0x12   :  { %378 = vmatpush.bf16.msrb.mxu1 %v743_v40  ;;  %353 = vmatpush.bf16.msra.mxu3 %v731_v49  ;;  %v723_v62 = vor.u32 %v839_v59, %v722_v57  ;;  %v663_v63 = vor.u32 %v822_v60, %v660_v61  ;;  %v724_v1 = vld [vmem:[#allocation2 + $0xd8] sm:$0xf0]  ;;  %v109_v2 = vmul.f32 256.0, %v1003_v54  ;;  %v650_v4 = vld [vmem:[#allocation2 + $0x40] sm:$0xf]  ;;  %vm113_vm1 = vweird.f32 %v1003_v54  ;;  %s929_s24 = smov [#allocation5]  }
  0x13   :  { %v727_v3 = vor.u32 %v838_v0, %v724_v1  ;;  %v821_v5 = vld [vmem:[#allocation2 + $0x44] sm:$0xf0]  ;;  %v714_v6 = vld [vmem:[#allocation2 + $0xc0] sm:$0xf]  ;;  %v820_v9 = vld [vmem:[#allocation2 + $0x44] sm:$0xf] }
  0x14   :  { %341 = vmatpush.bf16.msra.mxu2 %v659_v58  ;;  %v651_v7 = vor.u32 %v821_v5, %v650_v4  ;;  %v837_v8 = vld [vmem:[#allocation2 + $0xc4] sm:$0xf0]  ;;  %v652_v10 = vld [vmem:[#allocation2 + $0x48] sm:$0xf0]  ;;  %v836_v13 = vld [vmem:[#allocation2 + $0xc4] sm:$0xf] }
  0x15   :  { %366 = vmatpush.bf16.msrb.mxu0 %v671_v50  ;;  %v715_v11 = vor.u32 %v837_v8, %v714_v6  ;;  %v655_v12 = vor.u32 %v820_v9, %v652_v10  ;;  %v716_v14 = vld [vmem:[#allocation2 + $0xc8] sm:$0xf0]  ;;  %v708_v29 = vld [vmem:[#allocation2 + $0xb8] sm:$0xf0]  ;;  %v634_v31 = vld [vmem:[#allocation2 + $0x20] sm:$0xf] }
  0x16   :  { %379 = vmatpush.bf16.msrb.mxu1 %v735_v53  ;;  %354 = vmatpush.bf16.msra.mxu3 %v723_v62  ;;  %v817_v32 = vld [vmem:[#allocation2 + $0x24] sm:$0xf0]  ;;  %v698_v33 = vld [vmem:[#allocation2 + $0xa0] sm:$0xf]  ;;  %v816_v37 = vld [vmem:[#allocation2 + $0x24] sm:$0xf] }
  0x17   :  { %v635_v35 = vor.u32 %v817_v32, %v634_v31  ;;  %v833_v36 = vld [vmem:[#allocation2 + $0xa4] sm:$0xf0]  ;;  %v636_v38 = vld [vmem:[#allocation2 + $0x28] sm:$0xf0]  ;;  %v832_v41 = vld [vmem:[#allocation2 + $0xa4] sm:$0xf] }
  0x18   :  { %342 = vmatpush.bf16.msra.mxu2 %v651_v7  ;;  %v699_v39 = vor.u32 %v833_v36, %v698_v33  ;;  %v639_v40 = vor.u32 %v816_v37, %v636_v38  ;;  %v700_v42 = vld [vmem:[#allocation2 + $0xa8] sm:$0xf0]  ;;  %v626_v43 = vld [vmem:[#allocation2 + $0x10] sm:$0xf]  ;;  %v815_v45 = vld [vmem:[#allocation2 + $0x14] sm:$0xf0] }
  0x19   :  { %367 = vmatpush.bf16.msrb.mxu0 %v663_v63  ;;  %v703_v44 = vor.u32 %v832_v41, %v700_v42  ;;  %v690_v46 = vld [vmem:[#allocation2 + $0x90] sm:$0xf]  ;;  %v831_v47 = vld [vmem:[#allocation2 + $0x94] sm:$0xf0]  ;;  %v627_v48 = vor.u32 %v815_v45, %v626_v43  ;;  %v814_v50 = vld [vmem:[#allocation2 + $0x14] sm:$0xf] }
  0x1a   :  { %380 = vmatpush.bf16.msrb.mxu1 %v727_v3  ;;  %355 = vmatpush.bf16.msra.mxu3 %v715_v11  ;;  %v691_v49 = vor.u32 %v831_v47, %v690_v46  ;;  %v628_v51 = vld [vmem:[#allocation2 + $0x18] sm:$0xf0]  ;;  %v830_v52 = vld [vmem:[#allocation2 + $0x94] sm:$0xf]  ;;  %v618_v57 = vld [vmem:[#allocation2] sm:$0xf] }
  0x1b   :  { %v631_v55 = vor.u32 %v814_v50, %v628_v51  ;;  %v692_v56 = vld [vmem:[#allocation2 + $0x98] sm:$0xf0]  ;;  %v813_v58 = vld [vmem:[#allocation2 + $0x4] sm:$0xf0]  ;;  %v682_v60 = vld [vmem:[#allocation2 + $0x80] sm:$0xf] }
  0x1c   :  { %v695_v59 = vor.u32 %v830_v52, %v692_v56  ;;  %v829_v61 = vld [vmem:[#allocation2 + $0x84] sm:$0xf0]  ;;  %v812_v62 = vld [vmem:[#allocation2 + $0x4] sm:$0xf]  ;;  %v619_v0 = vor.u32 %v813_v58, %v618_v57  ;;  %v620_v1 = vld [vmem:[#allocation2 + $0x8] sm:$0xf0] }
  0x1d   :  { %368 = vmatpush.bf16.msrb.mxu0 %v655_v12  ;;  %v684_v3 = vld [vmem:[#allocation2 + $0x88] sm:$0xf0]  ;;  %v683_v4 = vor.u32 %v829_v61, %v682_v60  ;;  %v623_v5 = vor.u32 %v812_v62, %v620_v1  ;;  %v850_v50 = vld [vmem:[%s1090_s3 + $0x30] sm:$0xff]  ;;  %v856_v56 = vld [vmem:[%s1090_s3 + $0x60] sm:$0xff]  ;;  %s585_s25 = sshll.u32 %s929_s24, 4  ;;  %s587_s28 = sshll.u32 %s1092_s5, 4  ;;  %s586_s25 = int_to_ptr.vmem [resolvable:$true] %s585_s25  ;;  %s588_s28 = int_to_ptr.hbm [resolvable:$true] %s587_s28 }
  0x1e   :  { %v858_v51 = vld [vmem:[%s1090_s3 + $0x70] sm:$0xff]  ;;  %v849_v52 = vld [vmem:[%s1090_s3 + $0x28] sm:$0xff]  ;;  %v847_v57 = vld [vmem:[%s1090_s3 + $0x18] sm:$0xff]  ;;  %vm578_vm8 = vcmask 64512  }
  0x1f   :  { %v855_v58 = vld [vmem:[%s1090_s3 + $0x58] sm:$0xff]  ;;  %v854_v60 = vld [vmem:[%s1090_s3 + $0x50] sm:$0xff]  ;;  %v845_v61 = vld [vmem:[%s1090_s3 + $0x8] sm:$0xff] }
  0x20   :  { %v853_v62 = vld [vmem:[%s1090_s3 + $0x48] sm:$0xff]  ;;  %v852_v1 = vld [vmem:[%s1090_s3 + $0x40] sm:$0xff] }
  0x8d   :  { %v86_v17 = vpop.f32.mrf.mxu0 }
  0x8e   :  { %v87_v18 = vadd.f32 %v86_v17, %v49_v15  ;;  %v99_v19 = vpop.f32.mrf.mxu1  ;;  %v110_v15 = vsub.f32 1.0, %v109_v2  ;;  %v642_v17 = vld [vmem:[#allocation2 + $0x30] sm:$0xf]  ;;  %v828_v2 = vld [vmem:[#allocation2 + $0x84] sm:$0xf] }
  0x8f   :  { %v100_v20 = vadd.f32 %v99_v19, %v50_v16  ;;  %v719_v16 = vor.u32 %v836_v13, %v716_v14  ;;  %v706_v19 = vld [vmem:[#allocation2 + $0xb0] sm:$0xf]  ;;  %v687_v7 = vor.u32 %v828_v2, %v684_v3 }
  0x90   :  { %v993_v21 = vmax.f32 %v87_v18, 0.0  ;;  %v819_v18 = vld [vmem:[#allocation2 + $0x34] sm:$0xf0]  ;;  %v111_v34 = vmul.f32 %v1003_v54, %v110_v15 }
  0x91   :  { %v995_v22 = vmax.f32 %v100_v20, 0.0  ;;  %381 = vmatpush.bf16.msrb.mxu1 %v719_v16  ;;  %v643_v20 = vor.u32 %v819_v18, %v642_v17 }
  0x92   :  { %v116_v26 = vmul.f32 %v993_v21, %v993_v21  ;;  %v112_v53 = vadd.f32 %v1003_v54, %v111_v34 }
  0x93   :  { %v105_v23 = vadd.f32 %v995_v22, %v993_v21  ;;  %v117_v27 = vmul.f32 %v995_v22, %v995_v22  ;;  %343 = vmatpush.bf16.msra.mxu2 %v643_v20 }
  0x94   :  { %v1010_v6 = vsel %vm113_vm1, %v1003_v54, %v112_v53  ;;  %v857_v53 = vld [vmem:[%s1090_s3 + $0x68] sm:$0xff] }
  0x95   :  { %106 = vadd.xlane.f32.xlu0 %v105_v23  ;;  %v88_v24 = vpop.f32.mrf.mxu0  ;;  %v118_v28 = vadd.f32 %v117_v27, %v116_v26  ;;  %v835_v23 = vld [vmem:[#allocation2 + $0xb4] sm:$0xf0] }
  0x96   :  { %v101_v25 = vpop.f32.mrf.mxu1  ;;  %v818_v24 = vld [vmem:[#allocation2 + $0x34] sm:$0xf]  ;;  %v707_v26 = vor.u32 %v835_v23, %v706_v19 }
  0x97   :  { %v644_v25 = vld [vmem:[#allocation2 + $0x38] sm:$0xf0]  ;;  %344 = vmatpush.bf16.msra.mxu2 %v635_v35 }
  0x98   :  { %v647_v27 = vor.u32 %v818_v24, %v644_v25  ;;  %356 = vmatpush.bf16.msra.mxu3 %v707_v26 }
  0x9a   :  { %369 = vmatpush.bf16.msrb.mxu0 %v647_v27 }
  0x9b   :  { %345 = vmatpush.bf16.msra.mxu2 %v627_v48  ;;  %v851_v48 = vld [vmem:[%s1090_s3 + $0x38] sm:$0xff] }
  0x9c   :  { %357 = vmatpush.bf16.msra.mxu3 %v699_v39 }
  0x9d   :  { %119 = vadd.xlane.f32.xlu0 %v118_v28  ;;  %v834_v28 = vld [vmem:[#allocation2 + $0xb4] sm:$0xf] }
  0x9e   :  { %v711_v30 = vor.u32 %v834_v28, %v708_v29  ;;  %370 = vmatpush.bf16.msrb.mxu0 %v639_v40  ;;  %v597_v29 = vld [vmem:[%s1091_s4 + $0x1] ss:$8 sm:$0x3] }
  0x9f   :  { %346 = vmatpush.bf16.msra.mxu2 %v619_v0  ;;  %v175_v33 = vperm.slane %v597_v29, 0  ;;  %v844_v0 = vld [vmem:[%s1090_s3] sm:$0xff] }
  0xa0   :  { %382 = vmatpush.bf16.msrb.mxu1 %v711_v30  ;;  %358 = vmatpush.bf16.msra.mxu3 %v691_v49  ;;  %v176_v30 = vperm.slane %v597_v29, 1  ;;  %v859_v49 = vld [vmem:[%s1090_s3 + $0x78] sm:$0xff] }
  0xa2   :  { %371 = vmatpush.bf16.msrb.mxu0 %v631_v55  ;;  %v848_v55 = vld [vmem:[%s1090_s3 + $0x20] sm:$0xff] }
  0xa3   :  { %551 = vmatpush.bf16.msrb.mxu2 %v851_v48 }
  0xa4   :  { %383 = vmatpush.bf16.msrb.mxu1 %v703_v44  ;;  %359 = vmatpush.bf16.msra.mxu3 %v683_v4 }
  0xa6   :  { %372 = vmatpush.bf16.msrb.mxu0 %v623_v5 }
  0xa7   :  { %552 = vmatpush.bf16.msrb.mxu2 %v850_v50 }
  0xa8   :  { %384 = vmatpush.bf16.msrb.mxu1 %v695_v59  ;;  %564 = vmatpush.bf16.msrb.mxu3 %v859_v49  ;;  %v846_v59 = vld [vmem:[%s1090_s3 + $0x10] sm:$0xff] }
  0xab   :  { %553 = vmatpush.bf16.msrb.mxu2 %v849_v52 }
  0xac   :  { %385 = vmatpush.bf16.msrb.mxu1 %v687_v7  ;;  %565 = vmatpush.bf16.msrb.mxu3 %v858_v51 }
  0xaf   :  { %554 = vmatpush.bf16.msrb.mxu2 %v848_v55 }
  0xb0   :  { %566 = vmatpush.bf16.msrb.mxu3 %v857_v53 }
  0xb3   :  { %555 = vmatpush.bf16.msrb.mxu2 %v847_v57 }
  0xb4   :  { %567 = vmatpush.bf16.msrb.mxu3 %v856_v56 }
  0xb7   :  { %556 = vmatpush.bf16.msrb.mxu2 %v846_v59 }
  0xb8   :  { %568 = vmatpush.bf16.msrb.mxu3 %v855_v58 }
  0xbb   :  { %557 = vmatpush.bf16.msrb.mxu2 %v845_v61 }
  0xbc   :  { %569 = vmatpush.bf16.msrb.mxu3 %v854_v60 }
  0xbf   :  { %558 = vmatpush.bf16.msrb.mxu2 %v844_v0 }
  0xc0   :  { %570 = vmatpush.bf16.msrb.mxu3 %v853_v62 }
  0xc4   :  { %571 = vmatpush.bf16.msrb.mxu3 %v852_v1 }
 0x108   :  { %v107_v63 = vpop.xlane.xlu0 %106 }
 0x109   :  { %v115_v8 = vmul.f32 %v1010_v6, %v107_v63 }
 0x10b   :  { %v122_v10 = vmul.f32 %v115_v8, %v115_v8  ;;  %v125_v20 = vsub.f32 %v993_v21, %v115_v8  ;;  %v126_v23 = vsub.f32 %v995_v22, %v115_v8 }
 0x110   :  { %v120_v9 = vpop.xlane.xlu0 %119 }
 0x111   :  { %v121_v11 = vmul.f32 %v120_v9, %v1010_v6 }
 0x113   :  { %v123_v12 = vsub.f32 %v121_v11, %v122_v10 }
 0x115   :  { %v124_v13 = vmax.f32 %v123_v12, 0.0 }
 0x117   :  { %v127_v14 = vadd.f32 1e-05, %v124_v13 }
 0x119   :  { %867 = vrsqrt.f32 %v127_v14  ;;  %vm134_vm3 = vweird.f32 %v127_v14 }
 0x11f   :  { %v868_v15 = vpop.eup %867 }
 0x120   :  { %v129_v16 = vmul.f32 %v868_v15, %v127_v14  ;;  %vm135_vm2 = vweird.f32 %v868_v15 }
 0x121   :  { %vm136_vm4 = vmor %vm134_vm3, %vm135_vm2 }
 0x122   :  { %v130_v54 = vmul.f32 %v868_v15, %v129_v16 }
 0x124   :  { %v131_v17 = vmul.f32 0.5, %v130_v54 }
 0x126   :  { %v132_v18 = vsub.f32 1.5, %v131_v17 }
 0x128   :  { %v133_v19 = vmul.f32 %v868_v15, %v132_v18 }
 0x12a   :  { %v137_v24 = vsel %vm136_vm4, %v868_v15, %v133_v19 }
 0x12b   :  { %v138_v25 = vmul.f32 %v137_v24, %v125_v20  ;;  %v139_v26 = vmul.f32 %v137_v24, %v126_v23  ;;  %v42_v23 = vld [vmem:[%s1091_s4 + $0x2] ss:$0 sm:$0xff] }
 0x12d   :  { %v140_v27 = vpack.c.bf16 %v138_v25, %v138_v25  ;;  %v141_v28 = vpack.c.bf16 %v139_v26, %v139_v26 }
 0x12f   :  { %347 = vmatmul.bf16.vlgmr.msra.gmra.mxu2 %v140_v27  ;;  %360 = vmatmul.bf16.vlgmr.msra.gmra.mxu3 %v141_v28 }
 0x130   :  { %373 = vmatmul.bf16.vlgmr.msrb.gmra.mxu0 %v140_v27  ;;  %386 = vmatmul.bf16.vlgmr.msrb.gmra.mxu1 %v141_v28 }
 0x1ad   :  { %v374_v31 = vpop.f32.mrf.mxu0  ;;  %v387_v32 = vpop.f32.mrf.mxu1 }
 0x1ae   :  { %v375_v21 = vadd.f32 %v374_v31, %v176_v30 }
 0x1b0   :  { %v388_v35 = vadd.f32 %v387_v32, %v375_v21 }
 0x1b2   :  { %v348_v34 = vpop.f32.mrf.mxu2  ;;  %v361_v22 = vpop.f32.mrf.mxu3  ;;  %v1019_v40 = vmax.f32 %v388_v35, 0.0 }
 0x1b3   :  { %v349_v36 = vadd.f32 %v348_v34, %v175_v33 }
 0x1b4   :  { %v398_v46 = vmul.f32 %v1019_v40, %v1019_v40 }
 0x1b5   :  { %v362_v37 = vadd.f32 %v361_v22, %v349_v36  ;;  %v376_v38 = vpop.f32.mrf.mxu0  ;;  %v389_v39 = vpop.f32.mrf.mxu1 }
 0x1b7   :  { %v1021_v41 = vmax.f32 %v362_v37, 0.0 }
 0x1b9   :  { %v393_v42 = vadd.f32 %v1019_v40, %v1021_v41  ;;  %v397_v45 = vmul.f32 %v1021_v41, %v1021_v41 }
 0x1ba   :  { %v350_v43 = vpop.f32.mrf.mxu2  ;;  %v363_v44 = vpop.f32.mrf.mxu3 }
 0x1bb   :  { %394 = vadd.xlane.f32.xlu1 %v393_v42  ;;  %v399_v47 = vadd.f32 %v398_v46, %v397_v45 }
 0x1c3   :  { %400 = vadd.xlane.f32.xlu1 %v399_v47 }
 0x22e   :  { %v395_v63 = vpop.xlane.xlu1 %394 }
 0x22f   :  { %v396_v2 = vmul.f32 %v395_v63, %v1010_v6 }
 0x231   :  { %v403_v4 = vmul.f32 %v396_v2, %v396_v2  ;;  %v406_v16 = vsub.f32 %v1021_v41, %v396_v2  ;;  %v407_v54 = vsub.f32 %v1019_v40, %v396_v2 }
 0x236   :  { %v401_v3 = vpop.xlane.xlu1 %400 }
 0x237   :  { %v402_v5 = vmul.f32 %v401_v3, %v1010_v6 }
 0x239   :  { %v404_v7 = vsub.f32 %v402_v5, %v403_v4 }
 0x23b   :  { %v405_v8 = vmax.f32 %v404_v7, 0.0 }
 0x23d   :  { %v408_v9 = vadd.f32 1e-05, %v405_v8 }
 0x23f   :  { %869 = vrsqrt.f32 %v408_v9  ;;  %vm415_vm6 = vweird.f32 %v408_v9 }
 0x245   :  { %v870_v10 = vpop.eup %869 }
 0x246   :  { %v410_v11 = vmul.f32 %v870_v10, %v408_v9  ;;  %vm416_vm5 = vweird.f32 %v870_v10 }
 0x247   :  { %vm417_vm7 = vmor %vm415_vm6, %vm416_vm5 }
 0x248   :  { %v411_v12 = vmul.f32 %v870_v10, %v410_v11 }
 0x24a   :  { %v412_v13 = vmul.f32 0.5, %v411_v12 }
 0x24c   :  { %v413_v14 = vsub.f32 1.5, %v412_v13 }
 0x24e   :  { %v414_v15 = vmul.f32 %v870_v10, %v413_v14 }
 0x250   :  { %v418_v17 = vsel %vm417_vm7, %v870_v10, %v414_v15 }
 0x251   :  { %v419_v18 = vmul.f32 %v418_v17, %v406_v16  ;;  %v420_v6 = vmul.f32 %v418_v17, %v407_v54 }
 0x253   :  { %v421_v19 = vpack.c.bf16 %v419_v18, %v419_v18  ;;  %v422_v20 = vpack.c.bf16 %v420_v6, %v420_v6 }
 0x255   :  { %559 = vmatmul.bf16.vlgmr.msrb.gmra.mxu2 %v421_v19  ;;  %572 = vmatmul.bf16.vlgmr.msrb.gmra.mxu3 %v422_v20 }
 0x2d8   :  { %v560_v24 = vpop.f32.mrf.mxu2  ;;  %v573_v25 = vpop.f32.mrf.mxu3 }
 0x2d9   :  { %v561_v26 = vadd.f32 %v560_v24, %v42_v23 }
 0x2db   :  { %v574_v27 = vadd.f32 %v573_v25, %v561_v26 }
 0x2dd   :  { %871 = vtanh.f32 %v574_v27 }
 0x2e0   :  { %v562_v28 = vpop.f32.mrf.mxu2  ;;  %v575_v29 = vpop.f32.mrf.mxu3 }
 0x2e3   :  { %v872_v30 = vpop.eup %871 }
 0x2e4   :  { %579 = vst.msk [vmem:[#allocation5] sm:$0xff] %vm578_vm8, %v872_v30 }
 0x2e5   :  { %590 = dma.vmem_to_hbm [thread:$0]  %s586_s25, 128, %s588_s28, [#allocation4]  }
 0x2e6   :  { %923 = dma.done.wait [#allocation4], 128  }
 0x2e7   :  { %924 = vsyncadd [#allocation4], 4294967168 }
 0x2e8   :  { %595 = vsyncpa [#allocation3], 1 }
 0x2e9   :  { %596 = vsyncpa [#allocation4], 1 }

</bundles_post_ra>
